<compile_context>
chip_gen: v6e
topology: v6e:2x2x1
jax: 0.10.0
libtpu: 0.0.40
codegen_flags: <defaults>
</compile_context>

<pallas_src>
import functools
import math

import jax
import jax.numpy as jnp
from jax import lax
from jax.experimental import pallas as pl
from jax.experimental.pallas import tpu as pltpu


def _cdiv(a: int, b: int) -> int:
    return -(-a // b)


def _round_up(x: int, m: int) -> int:
    return _cdiv(x, m) * m


def _point_order_kernel(fs_ref, p0_ref, w_ref, b_ref, out_ref, sl_ref, cl_ref):
    """One (tr, dim_out_p) tile of packed positions.

    fs_ref  : (1, dim_in_p)         f32       per-column frequency scaled by the packing factor
    p0_ref  : (1, dim_in_p)         f32       per-column local phase offset (grp*f, +pi/2 on cos cols)
    w_ref   : (dim_in_p, dim_out_p) f32/bf16  kron(I_pack, W^T), zero-padded output columns
    b_ref   : (1, dim_out_p)        f32       tiled (zero-padded) bias
    out_ref : (tr, dim_out_p)       f32       lane-dense packed output tile
    sl_ref  : (tr, dim_in_p)        f32       scratch: sin(local phase), persistent across steps
    cl_ref  : (tr, dim_in_p)        f32       scratch: cos(local phase), persistent across steps
    """
    tr = out_ref.shape[0]

    # Build the local-phase tables once per core.  j == 0 is the first step of every i-row of
    # the grid, so this re-fires (harmlessly, identical values) when i advances on a single-core
    # chip and fires exactly once per TensorCore under a megacore split of the parallel axis.
    @pl.when(pl.program_id(1) == 0)
    def _init_tables():
        r = lax.broadcasted_iota(jnp.int32, sl_ref.shape, 0).astype(jnp.float32)
        local_phase = r * fs_ref[...] + p0_ref[...]
        sl_ref[...] = jnp.sin(local_phase)
        cl_ref[...] = jnp.cos(local_phase)

    # Linear tile index -> base packed row -> base phase.  Only 2*dim_in_p transcendentals per
    # grid step; the (tr, dim_in_p) embedding is reconstructed with pure VPU mul-adds below.
    t = pl.program_id(0) * pl.num_programs(1) + pl.program_id(1)
    base_rows = (t * tr).astype(jnp.float32)        # exact for positions < 2^24 (same as f32 ref)
    base_phase = base_rows * fs_ref[...]            # (1, dim_in_p)
    sb = jnp.sin(base_phase)
    cb = jnp.cos(base_phase)

    # sin(base + local) = sin(base)cos(local) + cos(base)sin(local); the sin-vs-cos column
    # selection is folded into p0 via a +pi/2 offset on the cos columns.
    emb = sb * cl_ref[...] + cb * sl_ref[...]       # (tr, dim_in_p), f32, VPU only

    y = jnp.dot(emb.astype(w_ref.dtype), w_ref[...],
                preferred_element_type=jnp.float32)             # MXU, f32 accumulate
    out_ref[...] = jnp.maximum(y + b_ref[...], 0.0)


def point_order_encoder(n_points: int, dim: int, weight: jax.Array, bias: jax.Array,
                        *, row_tile: int = 4096, mxu_dtype=jnp.bfloat16):
    """JAX wrapper mirroring PointOrderEncoder.forward(points) with points.shape[1] == n_points.
    Returns (1, n_points, dim) float32."""
    assert dim % 2 == 0 and dim >= 4, "dim must be even and >= 4 (half-1 > 0)"
    assert n_points >= 1
    half = dim // 2

    # --- lane packing: make the output last dim a multiple of 128 (unmasked vst stores) -------
    lcm = dim * 128 // math.gcd(dim, 128)
    if lcm <= 1024:                       # pack whole positions into lane-dense rows
        pack = lcm // dim
        dim_in_p = dim_out_p = lcm
    else:                                 # awkward dim: no packing, zero-pad W's output columns
        pack = 1
        dim_in_p = dim
        dim_out_p = _round_up(dim, 128)

    # --- tile selection on the packed-row axis --------------------------------------------------
    rows_total = _cdiv(n_points, pack)

    TILE_VMEM_BUDGET = 20 * 1024 * 1024   # working set per step (out dbl-buf + tables + temps)
    per_row_bytes = 16 * (dim_in_p + dim_out_p)
    max_rows = max(8, (TILE_VMEM_BUDGET // per_row_bytes) // 8 * 8)

    if rows_total <= 16:
        # tiny input: single full-extent block
        n_splits, steps, tr = 1, 1, rows_total
    else:
        n_splits = 2                       # keep both TensorCores busy on v7x (>= 2 work chunks)
        tr_cap = max(8, min(row_tile, max_rows) // 8 * 8)
        steps = _cdiv(rows_total, n_splits * tr_cap)            # grid steps per split
        tr = min(tr_cap, _round_up(_cdiv(rows_total, n_splits * steps), 8))
    rows_padded = n_splits * steps * tr    # every block fully in-bounds: no ragged tail / OOB masking

    # --- tiny per-column constant rows (the only per-call XLA precompute besides kron) ----------
    scale = math.log(10000.0) / (half - 1)
    freq = jnp.exp(jnp.arange(half, dtype=jnp.float32) * -scale)          # (half,)
    col = jnp.arange(dim_in_p, dtype=jnp.int32)
    grp = col // dim                        # packed position within a row
    cc = col % dim                          # original channel
    f_col = freq[cc % half]                 # (dim_in_p,)
    offset = jnp.where(cc >= half, jnp.float32(math.pi / 2.0), jnp.float32(0.0))  # cos = sin(x+pi/2)
    fs_row = (pack * f_col)[None, :]                                      # (1, dim_in_p)
    p0_row = (grp.astype(jnp.float32) * f_col + offset)[None, :]          # (1, dim_in_p)

    # --- packed linear layer: y_packed = emb_packed @ kron(I_pack, W^T), zero-padded columns ----
    wt = weight.astype(jnp.float32).T                                     # (dim, dim)
    w_p = jnp.kron(jnp.eye(pack, dtype=jnp.float32), wt)                  # (dim_in_p, pack*dim)
    b_p = jnp.tile(bias.astype(jnp.float32), pack)                        # (pack*dim,)
    if dim_out_p != pack * dim:
        w_p = jnp.pad(w_p, ((0, 0), (0, dim_out_p - pack * dim)))
        b_p = jnp.pad(b_p, (0, dim_out_p - pack * dim))
    w_p = w_p.astype(mxu_dtype)
    b_p = b_p[None, :]

    # Constant-index inputs: single-buffered (fetched once, stay resident in VMEM).
    in_specs = [
        pl.BlockSpec((1, dim_in_p), lambda i, j: (0, 0), pipeline_mode=pl.Buffered(1)),
        pl.BlockSpec((1, dim_in_p), lambda i, j: (0, 0), pipeline_mode=pl.Buffered(1)),
        pl.BlockSpec((dim_in_p, dim_out_p), lambda i, j: (0, 0), pipeline_mode=pl.Buffered(1)),
        pl.BlockSpec((1, dim_out_p), lambda i, j: (0, 0), pipeline_mode=pl.Buffered(1)),
    ]
    out_spec = pl.BlockSpec((tr, dim_out_p), lambda i, j: (i * steps + j, 0))

    out_packed = pl.pallas_call(
        _point_order_kernel,
        out_shape=jax.ShapeDtypeStruct((rows_padded, dim_out_p), jnp.float32),
        grid_spec=pltpu.PrefetchScalarGridSpec(
            num_scalar_prefetch=0,
            grid=(n_splits, steps),
            in_specs=in_specs,
            out_specs=out_spec,
            scratch_shapes=[pltpu.VMEM((tr, dim_in_p), jnp.float32),
                            pltpu.VMEM((tr, dim_in_p), jnp.float32)],
        ),
        compiler_params=pltpu.CompilerParams(
            dimension_semantics=("parallel", "arbitrary"),
            vmem_limit_bytes=40 * 1024 * 1024,
        ),
    )(fs_row, p0_row, w_p, b_p)

    # Undo lane packing (free row-major reshape), drop zero-padded columns and padded rows.
    out = out_packed[:, :pack * dim].reshape(rows_padded * pack, dim)[:n_points]
    return out[None, :, :]                                                # (1, N, dim)


def _reference(n_points: int, dim: int, weight, bias):
    """Pure-JAX reference matching the PyTorch forward."""
    half = dim // 2
    scale = math.log(10000.0) / (half - 1)
    freq = jnp.exp(jnp.arange(half, dtype=jnp.float32) * -scale)
    ts = jnp.arange(n_points, dtype=jnp.float32)
    phase = ts[:, None] * freq[None, :]
    emb = jnp.concatenate([jnp.sin(phase), jnp.cos(phase)], axis=-1)
    y = jnp.maximum(emb @ weight.T + bias, 0.0)
    return y[None]


if __name__ == "__main__":
    key = jax.random.PRNGKey(0)
    k_w, k_b, k_p = jax.random.split(key, 3)

    dim = 32          # embedding / linear dim
    batch, n_points, coord = 2, 8, 3

    # Deterministic parameter init for nn.Linear(dim, dim)
    bound = 1.0 / math.sqrt(dim)
    weight = jax.random.uniform(k_w, (dim, dim), jnp.float32, -bound, bound)
    bias = jax.random.uniform(k_b, (dim,), jnp.float32, -bound, bound)

    # "points" input — only its second dim (N) matters for the forward pass.
    points = jax.random.normal(k_p, (batch, n_points, coord), jnp.float32)

    # 1) primary check: module-sized shape, exact f32 matmul path (single tile)
    out = jax.block_until_ready(
        point_order_encoder(points.shape[1], dim, weight, bias, mxu_dtype=jnp.float32))
    ref = _reference(points.shape[1], dim, weight, bias)
    assert out.shape == (1, n_points, dim), out.shape
    assert jnp.allclose(out, ref, atol=1e-5, rtol=1e-5), "mismatch vs reference (N=8, f32)"

    # 2) multi-tile check: 2 parallel splits x 2 steps, padded tail rows, f32 matmul.
    #    Angle-addition introduces O(phase * 2^-24) drift vs direct sin/cos -> loosened tolerance.
    n2 = 100
    out2 = jax.block_until_ready(
        point_order_encoder(n2, dim, weight, bias, row_tile=8, mxu_dtype=jnp.float32))
    ref2 = _reference(n2, dim, weight, bias)
    assert out2.shape == (1, n2, dim), out2.shape
    assert jnp.allclose(out2, ref2, atol=1e-3, rtol=1e-3), "mismatch vs reference (N=100, f32)"

    # 3) default path: bf16 MXU operands, f32 accumulate (relaxed tolerance for bf16 rounding).
    out3 = jax.block_until_ready(point_order_encoder(n2, dim, weight, bias))
    assert out3.shape == (1, n2, dim), out3.shape
    assert jnp.allclose(out3, ref2, atol=2e-2, rtol=2e-2), "mismatch vs reference (N=100, bf16)"

    # 4) generalized lane packing: dim=48 -> pack=8, 384-wide lane-dense output, f32 matmul.
    dim2, n3 = 48, 37
    bound2 = 1.0 / math.sqrt(dim2)
    w2 = jax.random.uniform(k_w, (dim2, dim2), jnp.float32, -bound2, bound2)
    b2 = jax.random.uniform(k_b, (dim2,), jnp.float32, -bound2, bound2)
    out4 = jax.block_until_ready(
        point_order_encoder(n3, dim2, w2, b2, mxu_dtype=jnp.float32))
    ref4 = _reference(n3, dim2, w2, b2)
    assert out4.shape == (1, n3, dim2), out4.shape
    assert jnp.allclose(out4, ref4, atol=1e-3, rtol=1e-3), "mismatch vs reference (N=37, dim=48)"

    print("KERNEL_OK")
</pallas_src>

<mosaic_0001>
module attributes {stable_mosaic.version = 11 : i64} {
  func.func @_point_order_kernel(%arg0: i32, %arg1: i32, %arg2: memref<1x128xf32, #tpu.memory_space<vmem>>, %arg3: memref<1x128xf32, #tpu.memory_space<vmem>>, %arg4: memref<128x128xf32, #tpu.memory_space<vmem>>, %arg5: memref<1x128xf32, #tpu.memory_space<vmem>>, %arg6: memref<2x128xf32, #tpu.memory_space<vmem>>, %arg7: memref<2x128xf32, #tpu.memory_space<vmem>>, %arg8: memref<2x128xf32, #tpu.memory_space<vmem>>) attributes {dimension_semantics = [#tpu.dimension_semantics<parallel>, #tpu.dimension_semantics<arbitrary>], iteration_bounds = array<i64: 1, 1>, scalar_prefetch = 0 : i64, scratch_operands = 2 : i64, tpu.core_type = #tpu.core_type<tc>, window_params = [{pipeline_mode = #tpu.pipeline_mode<synchronous>, transform_indices = @transform_0, window_bounds = array<i64: 1, 128>}, {pipeline_mode = #tpu.pipeline_mode<synchronous>, transform_indices = @transform_1, window_bounds = array<i64: 1, 128>}, {pipeline_mode = #tpu.pipeline_mode<synchronous>, transform_indices = @transform_2, window_bounds = array<i64: 128, 128>}, {pipeline_mode = #tpu.pipeline_mode<synchronous>, transform_indices = @transform_3, window_bounds = array<i64: 1, 128>}, {transform_indices = @transform_4, window_bounds = array<i64: 2, 128>}]} {
    %c0_i32 = arith.constant 0 : i32
    %0 = arith.cmpi eq, %arg1, %c0_i32 : i32
    %1 = arith.extui %0 : i1 to i32
    %c0_i32_0 = arith.constant 0 : i32
    %2 = arith.cmpi ne, %1, %c0_i32_0 : i32
    scf.if %2 {
      %27 = tpu.iota {dimensions = array<i32: 0>} : vector<2x128xi32>
      %28 = arith.sitofp %27 : vector<2x128xi32> to vector<2x128xf32>
      %c0_13 = arith.constant 0 : index
      %c0_14 = arith.constant 0 : index
      %29 = vector.load %arg2[%c0_13, %c0_14] : memref<1x128xf32, #tpu.memory_space<vmem>>, vector<1x128xf32>
      %30 = vector.broadcast %29 : vector<1x128xf32> to vector<2x128xf32>
      %31 = arith.mulf %28, %30 : vector<2x128xf32>
      %c0_15 = arith.constant 0 : index
      %c0_16 = arith.constant 0 : index
      %32 = vector.load %arg3[%c0_15, %c0_16] : memref<1x128xf32, #tpu.memory_space<vmem>>, vector<1x128xf32>
      %33 = vector.broadcast %32 : vector<1x128xf32> to vector<2x128xf32>
      %34 = arith.addf %31, %33 : vector<2x128xf32>
      %35 = math.sin %34 : vector<2x128xf32>
      %c0_17 = arith.constant 0 : index
      %c0_18 = arith.constant 0 : index
      %36 = vector.load %arg7[%c0_17, %c0_18] : memref<2x128xf32, #tpu.memory_space<vmem>>, vector<2x128xf32>
      tpu.vector_store %arg7[%c0_17, %c0_18], %35 {strides = array<i32>} : memref<2x128xf32, #tpu.memory_space<vmem>>, vector<2x128xf32>,
      %37 = math.cos %34 : vector<2x128xf32>
      %c0_19 = arith.constant 0 : index
      %c0_20 = arith.constant 0 : index
      %38 = vector.load %arg8[%c0_19, %c0_20] : memref<2x128xf32, #tpu.memory_space<vmem>>, vector<2x128xf32>
      tpu.vector_store %arg8[%c0_19, %c0_20], %37 {strides = array<i32>} : memref<2x128xf32, #tpu.memory_space<vmem>>, vector<2x128xf32>,
    } else {
    }
    %c1_i32 = arith.constant 1 : i32
    %3 = arith.muli %arg0, %c1_i32 : i32
    %4 = arith.addi %3, %arg1 : i32
    %c2_i32 = arith.constant 2 : i32
    %5 = arith.muli %4, %c2_i32 : i32
    %6 = arith.sitofp %5 : i32 to f32
    %c0 = arith.constant 0 : index
    %c0_1 = arith.constant 0 : index
    %7 = vector.load %arg2[%c0, %c0_1] : memref<1x128xf32, #tpu.memory_space<vmem>>, vector<1x128xf32>
    %8 = vector.broadcast %6 : f32 to vector<1x128xf32>
    %9 = arith.mulf %8, %7 : vector<1x128xf32>
    %10 = math.sin %9 : vector<1x128xf32>
    %11 = math.cos %9 : vector<1x128xf32>
    %c0_2 = arith.constant 0 : index
    %c0_3 = arith.constant 0 : index
    %12 = vector.load %arg8[%c0_2, %c0_3] : memref<2x128xf32, #tpu.memory_space<vmem>>, vector<2x128xf32>
    %13 = vector.broadcast %10 : vector<1x128xf32> to vector<2x128xf32>
    %14 = arith.mulf %13, %12 : vector<2x128xf32>
    %c0_4 = arith.constant 0 : index
    %c0_5 = arith.constant 0 : index
    %15 = vector.load %arg7[%c0_4, %c0_5] : memref<2x128xf32, #tpu.memory_space<vmem>>, vector<2x128xf32>
    %16 = vector.broadcast %11 : vector<1x128xf32> to vector<2x128xf32>
    %17 = arith.mulf %16, %15 : vector<2x128xf32>
    %18 = arith.addf %14, %17 : vector<2x128xf32>
    %c0_6 = arith.constant 0 : index
    %c0_7 = arith.constant 0 : index
    %19 = vector.load %arg4[%c0_6, %c0_7] : memref<128x128xf32, #tpu.memory_space<vmem>>, vector<128x128xf32>
    %cst = arith.constant dense<0.000000e+00> : vector<2x128xf32>
    %20 = tpu.matmul %18, %19, %cst {dimension_numbers = #tpu.dot_dimension_numbers<[1], [0], [0], [1], [0, 0, 1, 1], [], []>} : vector<2x128xf32>, vector<128x128xf32>, vector<2x128xf32> -> vector<2x128xf32>
    %c0_8 = arith.constant 0 : index
    %c0_9 = arith.constant 0 : index
    %21 = vector.load %arg5[%c0_8, %c0_9] : memref<1x128xf32, #tpu.memory_space<vmem>>, vector<1x128xf32>
    %22 = vector.broadcast %21 : vector<1x128xf32> to vector<2x128xf32>
    %23 = arith.addf %20, %22 : vector<2x128xf32>
    %cst_10 = arith.constant 0.000000e+00 : f32
    %24 = vector.broadcast %cst_10 : f32 to vector<2x128xf32>
    %25 = arith.maximumf %23, %24 : vector<2x128xf32>
    %c0_11 = arith.constant 0 : index
    %c0_12 = arith.constant 0 : index
    %26 = vector.load %arg6[%c0_11, %c0_12] : memref<2x128xf32, #tpu.memory_space<vmem>>, vector<2x128xf32>
    tpu.vector_store %arg6[%c0_11, %c0_12], %25 {strides = array<i32>} : memref<2x128xf32, #tpu.memory_space<vmem>>, vector<2x128xf32>,
    return
  }
  func.func @transform_0(%arg0: i32, %arg1: i32) -> (i32, i32) {
    %c0_i32 = arith.constant 0 : i32
    %c0_i32_0 = arith.constant 0 : i32
    %c0_i32_1 = arith.constant 0 : i32
    return %c0_i32, %c0_i32_0 : i32, i32
  }
  func.func @transform_1(%arg0: i32, %arg1: i32) -> (i32, i32) {
    %c0_i32 = arith.constant 0 : i32
    %c0_i32_0 = arith.constant 0 : i32
    %c0_i32_1 = arith.constant 0 : i32
    return %c0_i32, %c0_i32_0 : i32, i32
  }
  func.func @transform_2(%arg0: i32, %arg1: i32) -> (i32, i32) {
    %c0_i32 = arith.constant 0 : i32
    %c0_i32_0 = arith.constant 0 : i32
    %c0_i32_1 = arith.constant 0 : i32
    return %c0_i32, %c0_i32_0 : i32, i32
  }
  func.func @transform_3(%arg0: i32, %arg1: i32) -> (i32, i32) {
    %c0_i32 = arith.constant 0 : i32
    %c0_i32_0 = arith.constant 0 : i32
    %c0_i32_1 = arith.constant 0 : i32
    return %c0_i32, %c0_i32_0 : i32, i32
  }
  func.func @transform_4(%arg0: i32, %arg1: i32) -> (i32, i32) {
    %c1_i32 = arith.constant 1 : i32
    %0 = arith.muli %arg0, %c1_i32 : i32
    %1 = arith.addi %0, %arg1 : i32
    %c0_i32 = arith.constant 0 : i32
    %c0_i32_0 = arith.constant 0 : i32
    return %1, %c0_i32 : i32, i32
  }
}

</mosaic_0001>

<bundles_post_ra>
// kernel: tpu_custom_call.1
= control target key start
LH: loop header
LB: loop body
LE: loop exit
PB: predicated region body
PF: predicated region fallthrough
CT: control target
= control target key end

     0   :  { %9 = vsyncpa [#allocation5], 0  ;;  %s971_s0 = inlined_call_operand.hbm [shape: f32[1,128], index: 0, kind: input, shape index: {}]   ;;  %s972_s1 = inlined_call_operand.vmem [shape: f32[1,128], index: 1, kind: input, shape index: {}]   ;;  %s973_s2 = inlined_call_operand.hbm [shape: f32[128,128], index: 2, kind: input, shape index: {}]   ;;  %s974_s3 = inlined_call_operand.vmem [shape: f32[1,128], index: 3, kind: input, shape index: {}]   ;;  %s975_s4 = inlined_call_operand.hbm [shape: f32[2,128], index: 4, kind: output, shape index: {}]  }
   0x1   :  { %10 = vsyncpa [#allocation8], 0 }
   0x2   :  { %11 = vsyncpa [#allocation6], 0  ;;  %s787_s15 = smov [#allocation4]   ;;  %s788_s17 = smov [#allocation7]  }
   0x3   :  { %s18_s16 = sshll.u32 %s787_s15, 4  ;;  %s29_s18 = sshll.u32 %s788_s17, 4  ;;  %s19_s16 = int_to_ptr.vmem [resolvable:$true] %s18_s16  ;;  %s30_s18 = int_to_ptr.vmem [resolvable:$true] %s29_s18 }
   0x4   :  { %s729_s19 = scalar_lea.vmem %s19_s16, 16  ;;  %s733_s20 = scalar_lea.vmem %s19_s16, 32 }
   0x5   :  { %p730_p0 = scmp.ne.s32.totalorder %s19_s16, %s729_s19  ;;  %p734_p1 = scmp.lt.s32.totalorder %s19_s16, %s19_s16 }
   0x6   :  { %p735_p2 = scmp.lt.s32.totalorder %s733_s20, %s729_s19 }
   0x8   :  { %p736_p3 = por %p735_p2, %p734_p1 }
   0xa   :  { %p737_p4 = pnand %p736_p3, %p730_p0 }
   0xc   :  { %740 = shalt.err (!%p737_p4)
}
   0xd   :  { %21 = dma.hbm_to_vmem [thread:$0]  %s971_s0, 16, %s19_s16, [#allocation5]  }
   0xe   :  { %s749_s23 = scalar_lea.vmem %s30_s18, 2048  ;;  %p754_p6 = scmp.lt.s32.totalorder %s30_s18, %s30_s18 }
   0xf   :  { %p750_p5 = scmp.ne.s32.totalorder %s30_s18, %s749_s23  ;;  %p755_p7 = scmp.lt.s32.totalorder %s749_s23, %s749_s23 }
  0x11   :  { %p756_p8 = por %p755_p7, %p754_p6 }
  0x13   :  { %p757_p9 = pnand %p756_p8, %p750_p5 }
  0x15   :  { %760 = shalt.err (!%p757_p9)
}
  0x16   :  { %s789_s24 = smov 128   ;;  %s790_s25 = smov 8  }
  0x17   :  { %35 = dma.hbm_to_vmem [thread:$0]  %s973_s2, 2048, %s30_s18, [#allocation8], %s789_s24, %s789_s24, %s790_s25  }
  0x18   :  { %781 = dma.done.wait [#allocation5], 16  }
  0x19   :  { %782 = vsyncadd [#allocation5], 4294967280 }
  0x1a   :  { %783 = dma.done.wait [#allocation8], 2048  }
  0x1b   :  { %784 = vsyncadd [#allocation8], 4294965248  ;;  %v791_v0 = vmov 0.0   ;;  %vm792_vm0 = vmmov 0   ;;  %v49_v1 = vlaneseq  ;;  %v522_v3 = vld [vmem:[#allocation7 + $0x78] sm:$0xff]  ;;  %v521_v4 = vld [vmem:[#allocation7 + $0x70] sm:$0xff] }
  0x1c   :  { %657 = vmatprep.subr.mxu0 %v791_v0  ;;  %689 = vmatprep.mubr.msk.f32.mxu0 %vm792_vm0, %v791_v0  ;;  %v520_v5 = vld [vmem:[#allocation7 + $0x68] sm:$0xff]  ;;  %v519_v7 = vld [vmem:[#allocation7 + $0x60] sm:$0xff]  ;;  %v621_v8 = vld [vmem:[#allocation4] ss:$0 sm:$0xff]  ;;  %v793_v44 = vmov 683565275  }
  0x1d   :  { %v833_v2 = vshrl.u32 %v49_v1, 7  ;;  %658 = vmatpush3.msra.mxu0 %v522_v3  ;;  %v622_v9 = vld [vmem:[%s972_s1] ss:$0 sm:$0xff]  ;;  %v280_v12 = vld [vmem:[#allocation4] sm:$0x1]  ;;  %v517_v14 = vld [vmem:[#allocation7 + $0x50] sm:$0xff] }
  0x1e   :  { %659 = vmatprep.subr.mxu0 %v791_v0  ;;  %v518_v10 = vld [vmem:[#allocation7 + $0x58] sm:$0xff]  ;;  %v842_v13 = vmul.f32 0.0, %v280_v12  ;;  %v516_v17 = vld [vmem:[#allocation7 + $0x48] sm:$0xff]  ;;  %v515_v21 = vld [vmem:[#allocation7 + $0x40] sm:$0xff]  ;;  %v794_v46 = vmov 2475754826  }
  0x1f   :  { %v51_v6 = vcvt.s32.f32 %v833_v2  ;;  %660 = vmatpush3.msra.mxu0 %v521_v4  ;;  %v514_v26 = vld [vmem:[#allocation7 + $0x38] sm:$0xff]  ;;  %v513_v29 = vld [vmem:[#allocation7 + $0x30] sm:$0xff]  ;;  %v512_v33 = vld [vmem:[#allocation7 + $0x28] sm:$0xff]  ;;  %v795_v52 = vmov 2131351028   ;;  %s799_s29 = smov [#allocation9]  }
  0x20   :  { %661 = vmatprep.subr.mxu0 %v791_v0  ;;  %v286_v16 = vand.u32 2139095040, %v842_v13  ;;  %v283_v24 = vand.u32 2147483647, %v842_v13  ;;  %v511_v37 = vld [vmem:[#allocation7 + $0x20] sm:$0xff]  ;;  %v510_v48 = vld [vmem:[#allocation7 + $0x18] sm:$0xff]  ;;  %v509_v59 = vld [vmem:[#allocation7 + $0x10] sm:$0xff] }
  0x21   :  { %662 = vmatpush3.msra.mxu0 %v520_v5  ;;  %v59_v11 = vmul.f32 %v621_v8, %v51_v6  ;;  %v796_v54 = vmov 2102212464   ;;  %v797_v56 = vmov 920167782   ;;  %v798_v3 = vmov 1326507024  }
  0x22   :  { %663 = vmatprep.subr.mxu0 %v791_v0  ;;  %v287_v20 = vshrl.u32 %v286_v16, 23  ;;  %v859_v32 = vand.u32 8388607, %v283_v24  ;;  %v508_v5 = vld [vmem:[#allocation7 + $0x8] sm:$0xff]  ;;  %s611_s30 = sshll.u32 %s799_s29, 4  ;;  %s612_s30 = int_to_ptr.vmem [resolvable:$true] %s611_s30 }
  0x23   :  { %664 = vmatpush3.msra.mxu0 %v519_v7  ;;  %v845_v15 = vadd.f32 %v622_v9, %v59_v11  ;;  %s761_s5 = scalar_lea.vmem %s612_s30, 32  ;;  %p766_p11 = scmp.lt.s32.totalorder %s612_s30, %s612_s30 }
  0x24   :  { %665 = vmatprep.subr.mxu0 %v791_v0  ;;  %v631_v25 = vadd.s32 4294967169, %v287_v20  ;;  %v291_v41 = vor.u32 8388608, %v859_v32  ;;  %p762_p10 = scmp.ne.s32.totalorder %s612_s30, %s761_s5  ;;  %p767_p12 = scmp.lt.s32.totalorder %s761_s5, %s761_s5 }
  0x25   :  { %666 = vmatpush3.msra.mxu0 %v518_v10  ;;  %v68_v18 = vand.u32 2147483647, %v845_v15  ;;  %v71_v19 = vand.u32 2139095040, %v845_v15  ;;  %vm70_vm15 = vcmp.lt.s32.totalorder %v845_v15, 0 }
  0x26   :  { %667 = vmatprep.subr.mxu0 %v791_v0  ;;  %v293_v28 = vadd.s32 1, %v631_v25  ;;  %p768_p13 = por %p767_p12, %p766_p11 }
  0x27   :  { %668 = vmatpush3.msra.mxu0 %v517_v14  ;;  %v72_v22 = vshrl.u32 %v71_v19, 23  ;;  %v75_v23 = vand.u32 8388607, %v68_v18  ;;  %v507_v14 = vld [vmem:[#allocation7] sm:$0xff]  ;;  %vm69_vm0 = vcmp.le.f32.partialorder %v68_v18, 0.7853982 }
  0x28   :  { %669 = vmatprep.subr.mxu0 %v791_v0  ;;  %vm294_vm1 = vcmp.gt.s32.totalorder %v293_v28, 0  ;;  %p769_p0 = pnand %p768_p13, %p762_p10 }
  0x29   :  { %670 = vmatpush3.msra.mxu0 %v516_v17  ;;  %v623_v27 = vadd.s32 4294967169, %v72_v22  ;;  %v76_v30 = vor.u32 8388608, %v75_v23  ;;  %v295_v34 = vsel %vm294_vm1, %v293_v28, 0  ;;  %vm285_vm1 = vcmp.lt.s32.totalorder %v842_v13, 0 }
  0x2a   :  { %671 = vmatprep.subr.mxu0 %v791_v0  ;;  %v862_v36 = vand.u32 31, %v295_v34  ;;  %v870_v42 = vshrl.u32 %v295_v34, 5 }
  0x2b   :  { %672 = vmatpush3.msra.mxu0 %v515_v21  ;;  %v78_v31 = vadd.s32 1, %v623_v27  ;;  %v867_v40 = vshll.u32 %v76_v30, 8 }
  0x2c   :  { %673 = vmatprep.subr.mxu0 %v791_v0  ;;  %v873_v43 = vsub.s32 32, %v862_v36  ;;  %v300_v45 = vshll.u32 %v793_v44, %v862_v36  ;;  %v303_v47 = vshll.u32 %v794_v46, %v862_v36  ;;  %v306_v58 = vshll.u32 %v795_v52, %v862_v36 }
  0x2d   :  { %674 = vmatpush3.msra.mxu0 %v514_v26  ;;  %vm79_vm2 = vcmp.gt.s32.totalorder %v78_v31, 0  ;;  %vm315_vm7 = vcmp.lt.s32.totalorder %v870_v42, 1  ;;  %vm316_vm8 = vcmp.lt.s32.totalorder %v870_v42, 2  ;;  %vm317_vm9 = vcmp.lt.s32.totalorder %v870_v42, 3 }
  0x2e   :  { %675 = vmatprep.subr.mxu0 %v791_v0  ;;  %v80_v35 = vsel %vm79_vm2, %v78_v31, 0  ;;  %v301_v11 = vshrl.u32 %v794_v46, %v873_v43  ;;  %v304_v12 = vshrl.u32 %v795_v52, %v873_v43  ;;  %v299_v25 = vshrl.u32 %v793_v44, %v873_v43 }
  0x2f   :  { %676 = vmatpush3.msra.mxu0 %v513_v29  ;;  %v865_v38 = vshrl.u32 %v80_v35, 5  ;;  %v82_v39 = vand.u32 31, %v80_v35  ;;  %vm318_vm10 = vcmp.lt.s32.totalorder %v870_v42, 4  ;;  %vm284_vm2 = vcmp.le.f32.partialorder %v283_v24, 0.7853982 }
  0x30   :  { %677 = vmatprep.subr.mxu0 %v791_v0  ;;  %v302_v29 = vor.u32 %v301_v11, %v300_v45  ;;  %v309_v45 = vshll.u32 %v796_v54, %v862_v36 }
  0x31   :  { %678 = vmatpush3.msra.mxu0 %v512_v33  ;;  %v83_v49 = vsub.s32 32, %v82_v39  ;;  %v85_v50 = vshll.u32 %v793_v44, %v82_v39  ;;  %v88_v51 = vshll.u32 %v794_v46, %v82_v39  ;;  %v91_v53 = vshll.u32 %v795_v52, %v82_v39 }
  0x32   :  { %679 = vmatprep.subr.mxu0 %v791_v0  ;;  %v94_v55 = vshll.u32 %v796_v54, %v82_v39  ;;  %v97_v57 = vshll.u32 %v797_v56, %v82_v39  ;;  %vm100_vm3 = vcmp.lt.s32.totalorder %v865_v38, 1  ;;  %vm101_vm4 = vcmp.lt.s32.totalorder %v865_v38, 2 }
  0x33   :  { %680 = vmatpush3.msra.mxu0 %v511_v37  ;;  %v84_v60 = vshrl.u32 %v793_v44, %v83_v49  ;;  %v86_v61 = vshrl.u32 %v794_v46, %v83_v49  ;;  %v89_v62 = vshrl.u32 %v795_v52, %v83_v49  ;;  %v92_v63 = vshrl.u32 %v796_v54, %v83_v49 }
  0x34   :  { %681 = vmatprep.subr.mxu0 %v791_v0  ;;  %v95_v1 = vshrl.u32 %v797_v56, %v83_v49  ;;  %v98_v4 = vshrl.u32 %v798_v3, %v83_v49  ;;  %vm102_vm5 = vcmp.lt.s32.totalorder %v865_v38, 3  ;;  %vm103_vm6 = vcmp.lt.s32.totalorder %v865_v38, 4 }
  0x35   :  { %682 = vmatpush3.msra.mxu0 %v510_v48  ;;  %v87_v6 = vor.u32 %v86_v61, %v85_v50  ;;  %v90_v7 = vor.u32 %v89_v62, %v88_v51  ;;  %v93_v8 = vor.u32 %v92_v63, %v91_v53  ;;  %v305_v33 = vor.u32 %v304_v12, %v303_v47 }
  0x36   :  { %683 = vmatprep.subr.mxu0 %v791_v0  ;;  %v96_v9 = vor.u32 %v95_v1, %v94_v55  ;;  %v99_v10 = vor.u32 %v98_v4, %v97_v57  ;;  %v310_v46 = vshrl.u32 %v797_v56, %v873_v43  ;;  %v312_v48 = vshll.u32 %v797_v56, %v862_v36 }
  0x37   :  { %684 = vmatpush3.msra.mxu0 %v509_v59  ;;  %v104_v16 = vsel %vm100_vm3, %v84_v60, %v87_v6  ;;  %v105_v17 = vsel %vm103_vm6, %v93_v8, 2102212464  ;;  %v108_v19 = vsel %vm100_vm3, %v87_v6, %v90_v7  ;;  %v112_v20 = vsel %vm100_vm3, %v90_v7, %v93_v8 }
  0x38   :  { %685 = vmatprep.subr.mxu0 %v791_v0  ;;  %v106_v21 = vsel %vm102_vm5, %v90_v7, %v105_v17  ;;  %v109_v22 = vsel %vm103_vm6, %v96_v9, 920167782  ;;  %v113_v23 = vsel %vm103_vm6, %v99_v10, 1326507024  ;;  %v313_v47 = vshrl.u32 %v798_v3, %v873_v43 }
  0x39   :  { %686 = vmatpush3.msra.mxu0 %v508_v5  ;;  %v107_v26 = vsel %vm101_vm4, %v104_v16, %v106_v21  ;;  %v110_v27 = vsel %vm102_vm5, %v93_v8, %v109_v22  ;;  %v114_v28 = vsel %vm102_vm5, %v96_v9, %v113_v23  ;;  %v331_v49 = vshll.u32 %v291_v41, 8 }
  0x3a   :  { %687 = vmatprep.subr.mxu0 %v791_v0  ;;  %v111_v30 = vsel %vm101_vm4, %v108_v19, %v110_v27  ;;  %v115_v31 = vsel %vm101_vm4, %v112_v20, %v114_v28  ;;  %v307_v0 = vshrl.u32 %v796_v54, %v873_v43  ;;  %v123_v38 = vmul.u32 %v867_v40, %v107_v26 }
  0x3b   :  { %688 = vmatpush3.msra.mxu0 %v507_v14  ;;  %v910_v34 = vmul.u32.u64.low %v867_v40, %v115_v31  ;;  %v911_v35 = vmul.u32.u64.high %v867_v40, %v115_v31, %v910_v34  ;;  %v914_v37 = vmul.u32.u64.low %v867_v40, %v111_v30  ;;  %v915_v39 = vmul.u32.u64.high %v867_v40, %v111_v30, %v914_v37 }
  0x3c   :  { %v308_v44 = vor.u32 %v307_v0, %v306_v58  ;;  %v311_v50 = vor.u32 %v310_v46, %v309_v45  ;;  %v314_v51 = vor.u32 %v313_v47, %v312_v48  ;;  %v323_v40 = vsel %vm315_vm7, %v302_v29, %v305_v33 }
  0x3d   :  { %vm125_vm11 = vc.u32 %v911_v35, %v914_v37  ;;  %v126_v36 = vadd.s32 1, %v915_v39  ;;  %v319_v52 = vsel %vm315_vm7, %v299_v25, %v302_v29  ;;  %v124_v22 = vadd.s32 %v914_v37, %v911_v35 }
  0x3e   :  { %v320_v43 = vsel %vm318_vm10, %v308_v44, 2102212464  ;;  %v324_v53 = vsel %vm318_vm10, %v311_v50, 920167782  ;;  %v327_v54 = vsel %vm315_vm7, %v305_v33, %v308_v44  ;;  %v328_v56 = vsel %vm318_vm10, %v314_v51, 1326507024 }
  0x3f   :  { %v127_v32 = vsel %vm125_vm11, %v126_v36, %v915_v39  ;;  %v321_v41 = vsel %vm317_vm9, %v305_v33, %v320_v43  ;;  %v325_v55 = vsel %vm317_vm9, %v308_v44, %v324_v53  ;;  %v329_v59 = vsel %vm317_vm9, %v311_v50, %v328_v56 }
  0x40   :  { %v128_v57 = vadd.s32 %v127_v32, %v123_v38  ;;  %v326_v58 = vsel %vm316_vm8, %v323_v40, %v325_v55  ;;  %v322_v60 = vsel %vm316_vm8, %v319_v52, %v321_v41  ;;  %v330_v61 = vsel %vm316_vm8, %v327_v54, %v329_v59 }
  0x41   :  { %v943_v62 = vmul.u32.u64.low %v331_v49, %v326_v58  ;;  %v944_v63 = vmul.u32.u64.high %v331_v49, %v326_v58, %v943_v62  ;;  %v946_v3 = vmul.u32.u64.low %v331_v49, %v330_v61  ;;  %v947_v4 = vmul.u32.u64.high %v331_v49, %v330_v61, %v946_v3 }
  0x42   :  { %v129_v1 = vadd.s32 536870912, %v128_v57  ;;  %v338_v6 = vmul.u32 %v331_v49, %v322_v60  ;;  %vm160_vm9 = vweird.f32 %v845_v15 }
  0x43   :  { %v341_v7 = vadd.s32 1, %v944_v63  ;;  %vm340_vm12 = vc.u32 %v947_v4, %v943_v62  ;;  %v339_v46 = vadd.s32 %v943_v62, %v947_v4 }
  0x44   :  { %v130_v5 = vshrl.u32 %v129_v1, 30 }
  0x45   :  { %v342_v9 = vsel %vm340_vm12, %v341_v7, %v944_v63 }
  0x46   :  { %v131_v8 = vshll.u32 %v130_v5, 30  ;;  %v343_v11 = vadd.s32 %v342_v9, %v338_v6  ;;  %v154_v50 = vsub.s32 4, %v130_v5 }
  0x48   :  { %v132_v10 = vsub.s32 %v128_v57, %v131_v8  ;;  %v344_v12 = vadd.s32 536870912, %v343_v11  ;;  %v155_v54 = vsel %vm70_vm15, %v154_v50, %v130_v5 }
  0x49   :  { %v157_v57 = vsel %vm69_vm0, 0, %v155_v54 }
  0x4a   :  { %v134_v42 = vsub.s32 0, %v132_v10  ;;  %v345_v16 = vshrl.u32 %v344_v12, 30  ;;  %v161_v60 = vadd.s32 3, %v157_v57  ;;  %v266_v3 = vand.u32 3, %v157_v57 }
  0x4c   :  { %v624_v14 = vmin.u32 %v134_v42, %v132_v10  ;;  %v346_v19 = vshll.u32 %v345_v16, 30  ;;  %v369_v59 = vsub.s32 4, %v345_v16  ;;  %v162_v1 = vand.u32 3, %v161_v60 }
  0x4d   :  { %vm271_vm4 = vcmp.eq.s32.totalorder %v266_v3, 2  ;;  %vm268_vm6 = vcmp.eq.s32.totalorder %v266_v3, 0  ;;  %vm267_vm8 = vcmp.lt.s32.totalorder %v266_v3, 2 }
  0x4e   :  { %v136_v17 = vclz %v624_v14  ;;  %v347_v21 = vsub.s32 %v343_v11, %v346_v19  ;;  %v370_v62 = vsel %vm285_vm1, %v369_v59, %v345_v16  ;;  %vm167_vm3 = vcmp.eq.s32.totalorder %v162_v1, 2 }
  0x4f   :  { %v372_v4 = vsel %vm284_vm2, 0, %v370_v62  ;;  %vm164_vm5 = vcmp.eq.s32.totalorder %v162_v1, 0  ;;  %vm163_vm7 = vcmp.lt.s32.totalorder %v162_v1, 2 }
  0x50   :  { %v625_v20 = vadd.s32 4294967294, %v136_v17  ;;  %v349_v25 = vsub.s32 0, %v347_v21  ;;  %v376_v8 = vadd.s32 3, %v372_v4  ;;  %v480_v17 = vand.u32 3, %v372_v4 }
  0x52   :  { %vm626_vm13 = vcmp.lt.s32.totalorder %v625_v20, 0  ;;  %v632_v29 = vmin.u32 %v349_v25, %v347_v21  ;;  %v377_v16 = vand.u32 3, %v376_v8  ;;  %vm485_vm11 = vcmp.eq.s32.totalorder %v480_v17, 2 }
  0x53   :  { %v139_v23 = vsel %vm626_vm13, 0, %v625_v20  ;;  %vm482_vm13 = vcmp.eq.s32.totalorder %v480_v17, 0 }
  0x54   :  { %v140_v26 = vsub.s32 32, %v139_v23  ;;  %v141_v27 = vshll.u32 %v132_v10, %v139_v23  ;;  %v144_v28 = vsub.s32 4294967266, %v139_v23  ;;  %v351_v33 = vclz %v632_v29 }
  0x55   :  { %vm382_vm10 = vcmp.eq.s32.totalorder %v377_v16, 2  ;;  %vm379_vm12 = vcmp.eq.s32.totalorder %v377_v16, 0 }
  0x56   :  { %v142_v30 = vshrl.u32 %v124_v22, %v140_v26  ;;  %v145_v31 = vadd.s32 127, %v144_v28  ;;  %v633_v39 = vadd.s32 4294967294, %v351_v33 }
  0x58   :  { %v143_v0 = vor.u32 %v142_v30, %v141_v27  ;;  %v146_v34 = vshll.u32 %v145_v31, 23  ;;  %vm634_vm14 = vcmp.lt.s32.totalorder %v633_v39, 0  ;;  %v494_v27 = vsub.s32 0, %v833_v2 }
  0x59   :  { %v354_v35 = vsel %vm634_vm14, 0, %v633_v39  ;;  %vm378_vm14 = vcmp.lt.s32.totalorder %v377_v16, 2 }
  0x5a   :  { %v147_v44 = vor.u32 4788187, %v146_v34  ;;  %v150_v45 = vcvt.s32.f32 %v143_v0  ;;  %v355_v37 = vsub.s32 32, %v354_v35  ;;  %v356_v38 = vshll.u32 %v347_v21, %v354_v35 }
  0x5b   :  { %v359_v47 = vsub.s32 4294967266, %v354_v35 }
  0x5c   :  { %v148_v48 = vand.u32 2147483647, %v147_v44  ;;  %v357_v36 = vshrl.u32 %v339_v46, %v355_v37 }
  0x5d   :  { %v360_v51 = vadd.s32 127, %v359_v47 }
  0x5e   :  { %v151_v49 = vmul.f32 %v150_v45, %v148_v48  ;;  %v358_v52 = vor.u32 %v357_v36, %v356_v38 }
  0x5f   :  { %v361_v43 = vshll.u32 %v360_v51, 23 }
  0x60   :  { %v152_v40 = vxor.u32 2147483648, %v151_v49  ;;  %v365_v55 = vcvt.s32.f32 %v358_v52 }
  0x61   :  { %v362_v41 = vor.u32 4788187, %v361_v43 }
  0x62   :  { %v153_v53 = vsel %vm70_vm15, %v152_v40, %v151_v49  ;;  %vm481_vm15 = vcmp.lt.s32.totalorder %v480_v17, 2 }
  0x63   :  { %v156_v32 = vsel %vm69_vm0, %v845_v15, %v153_v53  ;;  %v363_v56 = vand.u32 2147483647, %v362_v41  ;;  %vm375_vm0 = vweird.f32 %v842_v13 }
  0x64   :  { %713 = vcosq.f32 %v156_v32 }
  0x65   :  { %715 = vsinq.f32 %v156_v32  ;;  %v366_v58 = vmul.f32 %v365_v55, %v363_v56 }
  0x67   :  { %v367_v18 = vxor.u32 2147483648, %v366_v58 }
  0x69   :  { %v368_v61 = vsel %vm285_vm1, %v367_v18, %v366_v58 }
  0x6a   :  { %v371_v63 = vsel %vm284_vm2, %v842_v13, %v368_v61  ;;  %v639_v13 = vld [vmem:[%s974_s3] ss:$0 sm:$0xff] }
  0x6b   :  { %717 = vcosq.f32 %v371_v63 }
  0x6c   :  { %719 = vsinq.f32 %v371_v63 }
  0x71   :  { %v714_v5 = vpop.eup %713 }
  0x72   :  { %v716_v6 = vpop.eup %715  ;;  %v168_v7 = vxor.u32 2147483648, %v714_v5 }
  0x73   :  { %v165_v24 = vxor.u32 2147483648, %v716_v6 }
  0x74   :  { %v169_v9 = vsel %vm167_vm3, %v168_v7, %v716_v6  ;;  %v273_v10 = vsel %vm271_vm4, %v168_v7, %v716_v6 }
  0x75   :  { %v166_v11 = vsel %vm164_vm5, %v714_v5, %v165_v24  ;;  %v270_v42 = vsel %vm268_vm6, %v714_v5, %v165_v24 }
  0x76   :  { %v170_v12 = vsel %vm163_vm7, %v166_v11, %v169_v9  ;;  %v274_v14 = vsel %vm267_vm8, %v270_v42, %v273_v10 }
  0x77   :  { %v171_v19 = vsel %vm160_vm9, nan, %v170_v12  ;;  %v275_v20 = vsel %vm160_vm9, nan, %v274_v14 }
  0x78   :  { %172 = vst [vmem:[#allocation2] sm:$0x3] %v171_v19  ;;  %276 = vst [vmem:[#allocation3] sm:$0x3] %v275_v20  ;;  %v718_v21 = vpop.eup %717 }
  0x79   :  { %v720_v22 = vpop.eup %719  ;;  %v383_v23 = vxor.u32 2147483648, %v718_v21 }
  0x7a   :  { %v380_v15 = vxor.u32 2147483648, %v720_v22 }
  0x7b   :  { %v384_v25 = vsel %vm382_vm10, %v383_v23, %v720_v22  ;;  %v487_v26 = vsel %vm485_vm11, %v383_v23, %v720_v22 }
  0x7c   :  { %v381_v28 = vsel %vm379_vm12, %v718_v21, %v380_v15  ;;  %v484_v29 = vsel %vm482_vm13, %v718_v21, %v380_v15 }
  0x7d   :  { %v385_v30 = vsel %vm378_vm14, %v381_v28, %v384_v25  ;;  %v488_v31 = vsel %vm481_vm15, %v484_v29, %v487_v26 }
  0x7e   :  { %v386_v33 = vsel %vm375_vm0, nan, %v385_v30  ;;  %v489_v0 = vsel %vm375_vm0, nan, %v488_v31 }
  0x7f   :  { %v490_v34 = vld [vmem:[#allocation3] sm:$0x3]  ;;  %v498_v39 = vld [vmem:[#allocation2] sm:$0x3]  ;;  %v495_v44 = vrot.slane %v386_v33, %v494_v27  ;;  %v503_v45 = vrot.slane %v489_v0, %v494_v27 }
  0x81   :  { %v497_v46 = vmul.f32 %v495_v44, %v490_v34  ;;  %v505_v48 = vmul.f32 %v503_v45, %v498_v39 }
  0x83   :  { %v506_v35 = vadd.f32 %v505_v48, %v497_v46 }
  0x85   :  { %690 = vmatmul.mubr.f32.vlgmr.msra.gmra.mxu0 %v506_v35 }
 0x145   :  { %v596_v37 = vpop.f32.mrf.mxu0 }
 0x146   :  { %v597_v2 = vadd.f32 %v639_v13, %v596_v37 }
 0x147   :  { %v691_v38 = vpop.f32.mrf.mxu0 }
 0x148   :  { %v600_v47 = vmax.f32 %v597_v2, 0.0 }
 0x14a   :  { %601 = vst [vmem:[#allocation9] sm:$0x3] %v600_v47 }
 0x14b   :  { %772 = shalt.err (!%p769_p0)
}
 0x14c   :  { %614 = dma.vmem_to_hbm [thread:$0]  %s612_s30, 32, %s975_s4, [#allocation6]  }
 0x14d   :  { %785 = dma.done.wait [#allocation6], 32  }
 0x14e   :  { %786 = vsyncadd [#allocation6], 4294967264 }
 0x14f   :  { %618 = vsyncpa [#allocation5], 1 }
 0x150   :  { %619 = vsyncpa [#allocation8], 1 }
 0x151   :  { %620 = vsyncpa [#allocation6], 1 }

</bundles_post_ra>
